<compile_context>
chip_gen: v6e
topology: v6e:2x2x1
jax: 0.10.0
libtpu: 0.0.40
codegen_flags: <defaults>
</compile_context>

<pallas_src>
import functools
import math

import jax
import jax.numpy as jnp
from jax.experimental import pallas as pl

BN_EPS = 1e-5
LANE = 128


def _round_up(n, m):
    return ((n + m - 1) // m) * m


def _mlp_bn_kernel(x_ref, w1t_ref, params_ref, w2t_ref, o_ref, *,
                   h_pad, out_pad, inv_batch):
    # x_ref      : (B, In)      f32   unpadded; cast to bf16 in-kernel
    # w1t_ref    : (In, H_p)    bf16  pre-transposed (contraction on stored axis)
    # params_ref : (3, P)       f32   rows = [gamma, beta, b2]  (single DMA)
    # w2t_ref    : (H_p, Out_p) bf16  pre-transposed
    # o_ref      : (B, Out_p)   f32   lane-dense output (unmasked stores)
    params = params_ref[...]
    gamma = params[0:1, :h_pad]
    beta = params[1:2, :h_pad]
    b2 = params[2:3, :out_pad]

    x = x_ref[...].astype(jnp.bfloat16)

    # ---- linear1 (bias dropped: it cancels exactly under training-mode BN) ----
    h = jnp.dot(x, w1t_ref[...], preferred_element_type=jnp.float32)   # (B, H_p) f32

    # ---- BatchNorm1d (training mode), f32, two-pass stats, folded scale/shift ----
    mean = jnp.sum(h, axis=0, keepdims=True) * inv_batch               # (1, H_p)
    hc = h - mean
    var = jnp.sum(hc * hc, axis=0, keepdims=True) * inv_batch          # biased var
    scale = gamma * jax.lax.rsqrt(var + BN_EPS)                        # EUP rsqrt

    # ---- ReLU + linear2 (bf16 MXU operands, f32 accumulation) ----
    a = jnp.maximum(hc * scale + beta, 0.0).astype(jnp.bfloat16)
    o_ref[...] = jnp.dot(a, w2t_ref[...],
                         preferred_element_type=jnp.float32) + b2


def prepare_custom_model_params(w1, b1, gamma, beta, w2, b2):
    """One-time layout prep (run at init, NOT per forward call).

    Takes PyTorch-layout weights (out, in) and returns pre-transposed,
    lane-padded bf16 MXU operands plus one packed f32 param block.
    b1 is dropped: adding a per-feature constant before training-mode
    BatchNorm is an exact no-op (mean absorbs it, variance is shift-invariant).
    """
    del b1
    hid_dim, in_dim = w1.shape
    out_dim = w2.shape[0]
    h_p = _round_up(hid_dim, LANE)
    out_p = _round_up(out_dim, LANE)
    p = max(h_p, out_p)

    w1t = jnp.zeros((in_dim, h_p), jnp.bfloat16).at[:, :hid_dim].set(
        w1.T.astype(jnp.bfloat16))
    w2t = jnp.zeros((h_p, out_p), jnp.bfloat16).at[:hid_dim, :out_dim].set(
        w2.T.astype(jnp.bfloat16))

    params = jnp.zeros((3, p), jnp.float32)
    params = params.at[0, :hid_dim].set(gamma.reshape(-1))
    params = params.at[1, :hid_dim].set(beta.reshape(-1))
    params = params.at[2, :out_dim].set(b2.reshape(-1))

    return {"w1t": w1t, "params": params, "w2t": w2t,
            "h_p": h_p, "out_p": out_p, "out_dim": out_dim}


def make_custom_model_forward(w1, b1, gamma, beta, w2, b2):
    """Builds a jitted forward closure over the prepped (padded/transposed) weights."""
    pp = prepare_custom_model_params(w1, b1, gamma, beta, w2, b2)
    w1t, params, w2t = pp["w1t"], pp["params"], pp["w2t"]
    h_p, out_p, out_dim = pp["h_p"], pp["out_p"], pp["out_dim"]

    full = lambda shape: pl.BlockSpec(shape, lambda: (0,) * len(shape))

    @jax.jit
    def forward(x):
        batch = x.shape[0]
        kernel = functools.partial(
            _mlp_bn_kernel, h_pad=h_p, out_pad=out_p, inv_batch=1.0 / batch)
        out_padded = pl.pallas_call(
            kernel,
            out_shape=jax.ShapeDtypeStruct((batch, out_p), jnp.float32),
            in_specs=[full(x.shape), full(w1t.shape),
                      full(params.shape), full(w2t.shape)],
            out_specs=full((batch, out_p)),
        )(x, w1t, params, w2t)
        return out_padded[:, :out_dim]

    return forward


def xavier_uniform(key, out_features, in_features):
    """PyTorch nn.init.xavier_uniform_ with gain=1."""
    bound = math.sqrt(6.0 / (in_features + out_features))
    return jax.random.uniform(
        key, (out_features, in_features), jnp.float32, minval=-bound, maxval=bound)


def reference_forward_f32(x, w1, b1, gamma, beta, w2, b2):
    """Plain-JAX f32 reference (PyTorch training-mode semantics)."""
    h = x @ w1.T + b1
    mean = jnp.mean(h, axis=0, keepdims=True)
    var = jnp.mean((h - mean) ** 2, axis=0, keepdims=True)
    h = (h - mean) / jnp.sqrt(var + BN_EPS) * gamma + beta
    a = jnp.maximum(h, 0.0)
    return a @ w2.T + b2


def reference_forward_matched(x, w1, b1, gamma, beta, w2, b2):
    """Reference with the same bf16-operand / f32-accumulate matmul math as the kernel."""
    h = jnp.dot(x.astype(jnp.bfloat16), w1.T.astype(jnp.bfloat16),
                preferred_element_type=jnp.float32) + b1
    mean = jnp.mean(h, axis=0, keepdims=True)
    hc = h - mean
    var = jnp.mean(hc * hc, axis=0, keepdims=True)
    a = jnp.maximum(hc * (gamma * jax.lax.rsqrt(var + BN_EPS)) + beta,
                    0.0).astype(jnp.bfloat16)
    return jnp.dot(a, w2.T.astype(jnp.bfloat16),
                   preferred_element_type=jnp.float32) + b2


if __name__ == "__main__":
    # Shapes implied by the module: input_dim=10 (torch.randn(·, 10)),
    # hidden_dim=32, output_dim=8; batch=8 (BatchNorm1d training needs batch>1,
    # and 8 rows fill one f32 sublane tile).
    batch, input_dim, hidden_dim, output_dim = 8, 10, 32, 8

    key = jax.random.PRNGKey(0)
    k_x, k_w1, k_w2 = jax.random.split(key, 3)

    x = jax.random.normal(k_x, (batch, input_dim), jnp.float32)

    # _initialize_weights(): Linear -> xavier_uniform weight, zero bias;
    # BatchNorm1d -> gamma=1, beta=0.
    w1 = xavier_uniform(k_w1, hidden_dim, input_dim)          # (H, In)
    b1 = jnp.zeros((hidden_dim,), jnp.float32)
    gamma = jnp.ones((hidden_dim,), jnp.float32)
    beta = jnp.zeros((hidden_dim,), jnp.float32)
    w2 = xavier_uniform(k_w2, output_dim, hidden_dim)         # (Out, H)
    b2 = jnp.zeros((output_dim,), jnp.float32)

    # One-time prep + jitted forward (per-call path = pallas_call + slice only).
    forward = make_custom_model_forward(w1, b1, gamma, beta, w2, b2)
    out = jax.block_until_ready(forward(x))

    ref_matched = reference_forward_matched(x, w1, b1, gamma, beta, w2, b2)
    ref_f32 = reference_forward_f32(x, w1, b1, gamma, beta, w2, b2)

    assert out.shape == (batch, output_dim)
    # Tight check against the operand-matched reference (same bf16 matmul math).
    assert jnp.allclose(out, ref_matched, atol=1e-4, rtol=1e-4), \
        "mismatch vs bf16-matched reference"
    # Looser check against the full-f32 PyTorch-semantics reference
    # (slack accounts only for bf16 matmul operand rounding).
    assert jnp.allclose(out, ref_f32, atol=5e-2, rtol=5e-2), \
        "mismatch vs f32 reference"

    print("KERNEL_OK")
</pallas_src>

<mosaic_0001>
module attributes {stable_mosaic.version = 11 : i64} {
  func.func @_mlp_bn_kernel(%arg0: memref<8x10xf32, #tpu.memory_space<vmem>>, %arg1: memref<10x128xbf16, #tpu.memory_space<vmem>>, %arg2: memref<3x128xf32, #tpu.memory_space<vmem>>, %arg3: memref<128x128xbf16, #tpu.memory_space<vmem>>, %arg4: memref<8x128xf32, #tpu.memory_space<vmem>>) attributes {dimension_semantics = [], scalar_prefetch = 0 : i64, scratch_operands = 0 : i64, tpu.core_type = #tpu.core_type<tc>} {
    %c0 = arith.constant 0 : index
    %c0_0 = arith.constant 0 : index
    %0 = vector.load %arg2[%c0, %c0_0] : memref<3x128xf32, #tpu.memory_space<vmem>>, vector<3x128xf32>
    %1 = vector.extract_strided_slice %0 {offsets = [0, 0], sizes = [1, 128], strides = [1, 1]} : vector<3x128xf32> to vector<1x128xf32>
    %2 = vector.extract_strided_slice %0 {offsets = [1, 0], sizes = [1, 128], strides = [1, 1]} : vector<3x128xf32> to vector<1x128xf32>
    %3 = vector.extract_strided_slice %0 {offsets = [2, 0], sizes = [1, 128], strides = [1, 1]} : vector<3x128xf32> to vector<1x128xf32>
    %c0_1 = arith.constant 0 : index
    %c0_2 = arith.constant 0 : index
    %4 = vector.load %arg0[%c0_1, %c0_2] : memref<8x10xf32, #tpu.memory_space<vmem>>, vector<8x10xf32>
    %5 = arith.truncf %4 : vector<8x10xf32> to vector<8x10xbf16>
    %c0_3 = arith.constant 0 : index
    %c0_4 = arith.constant 0 : index
    %6 = vector.load %arg1[%c0_3, %c0_4] : memref<10x128xbf16, #tpu.memory_space<vmem>>, vector<10x128xbf16>
    %cst = arith.constant dense<0.000000e+00> : vector<8x128xf32>
    %7 = tpu.matmul %5, %6, %cst {dimension_numbers = #tpu.dot_dimension_numbers<[1], [0], [0], [1], [0, 0, 1, 1], [], []>} : vector<8x10xbf16>, vector<10x128xbf16>, vector<8x128xf32> -> vector<8x128xf32>
    %cst_5 = arith.constant dense<0.000000e+00> : vector<128xf32>
    %8 = vector.multi_reduction <add>, %7, %cst_5 [0] : vector<8x128xf32> to vector<128xf32>
    %9 = vector.shape_cast %8 : vector<128xf32> to vector<1x128xf32>
    %cst_6 = arith.constant 1.250000e-01 : f32
    %10 = vector.broadcast %cst_6 : f32 to vector<1x128xf32>
    %11 = arith.mulf %9, %10 : vector<1x128xf32>
    %12 = vector.broadcast %11 : vector<1x128xf32> to vector<8x128xf32>
    %13 = arith.subf %7, %12 : vector<8x128xf32>
    %14 = arith.mulf %13, %13 : vector<8x128xf32>
    %cst_7 = arith.constant dense<0.000000e+00> : vector<128xf32>
    %15 = vector.multi_reduction <add>, %14, %cst_7 [0] : vector<8x128xf32> to vector<128xf32>
    %16 = vector.shape_cast %15 : vector<128xf32> to vector<1x128xf32>
    %cst_8 = arith.constant 1.250000e-01 : f32
    %17 = vector.broadcast %cst_8 : f32 to vector<1x128xf32>
    %18 = arith.mulf %16, %17 : vector<1x128xf32>
    %cst_9 = arith.constant 9.99999974E-6 : f32
    %19 = vector.broadcast %cst_9 : f32 to vector<1x128xf32>
    %20 = arith.addf %18, %19 : vector<1x128xf32>
    %21 = math.rsqrt %20 : vector<1x128xf32>
    %22 = arith.mulf %1, %21 : vector<1x128xf32>
    %23 = vector.broadcast %22 : vector<1x128xf32> to vector<8x128xf32>
    %24 = arith.mulf %13, %23 : vector<8x128xf32>
    %25 = vector.broadcast %2 : vector<1x128xf32> to vector<8x128xf32>
    %26 = arith.addf %24, %25 : vector<8x128xf32>
    %cst_10 = arith.constant 0.000000e+00 : f32
    %27 = vector.broadcast %cst_10 : f32 to vector<8x128xf32>
    %28 = arith.maximumf %26, %27 : vector<8x128xf32>
    %29 = arith.truncf %28 : vector<8x128xf32> to vector<8x128xbf16>
    %c0_11 = arith.constant 0 : index
    %c0_12 = arith.constant 0 : index
    %30 = vector.load %arg3[%c0_11, %c0_12] : memref<128x128xbf16, #tpu.memory_space<vmem>>, vector<128x128xbf16>
    %cst_13 = arith.constant dense<0.000000e+00> : vector<8x128xf32>
    %31 = tpu.matmul %29, %30, %cst_13 {dimension_numbers = #tpu.dot_dimension_numbers<[1], [0], [0], [1], [0, 0, 1, 1], [], []>} : vector<8x128xbf16>, vector<128x128xbf16>, vector<8x128xf32> -> vector<8x128xf32>
    %32 = vector.broadcast %3 : vector<1x128xf32> to vector<8x128xf32>
    %33 = arith.addf %31, %32 : vector<8x128xf32>
    %c0_14 = arith.constant 0 : index
    %c0_15 = arith.constant 0 : index
    %34 = vector.load %arg4[%c0_14, %c0_15] : memref<8x128xf32, #tpu.memory_space<vmem>>, vector<8x128xf32>
    tpu.vector_store %arg4[%c0_14, %c0_15], %33 {strides = array<i32>} : memref<8x128xf32, #tpu.memory_space<vmem>>, vector<8x128xf32>,
    return
  }
}

</mosaic_0001>

<bundles_post_ra>
// kernel: forward.1
= control target key start
LH: loop header
LB: loop body
LE: loop exit
PB: predicated region body
PF: predicated region fallthrough
CT: control target
= control target key end

     0   :  { %9 = vsyncpa [#allocation3], 0  ;;  %s515_s0 = inlined_call_operand.hbm [shape: f32[8,10], index: 0, kind: input, shape index: {}]   ;;  %s516_s1 = inlined_call_operand.hbm [shape: bf16[10,128], index: 1, kind: input, shape index: {}]   ;;  %s517_s2 = inlined_call_operand.hbm [shape: f32[3,128], index: 2, kind: input, shape index: {}]   ;;  %s518_s3 = inlined_call_operand.hbm [shape: bf16[128,128], index: 3, kind: input, shape index: {}]   ;;  %s519_s4 = inlined_call_operand.hbm [shape: f32[8,128], index: 4, kind: output, shape index: {}]  }
   0x1   :  { %10 = vsyncpa [#allocation6], 0 }
   0x2   :  { %11 = vsyncpa [#allocation9], 0 }
   0x3   :  { %12 = vsyncpa [#allocation4], 0  ;;  %s460_s15 = smov [#allocation5]  }
   0x4   :  { %s28_s16 = sshll.u32 %s460_s15, 4  ;;  %s29_s16 = int_to_ptr.vmem [resolvable:$true] %s28_s16 }
   0x5   :  { %s360_s17 = scalar_lea.vmem %s29_s16, 128  ;;  %p365_p1 = scmp.lt.s32.totalorder %s29_s16, %s29_s16 }
   0x6   :  { %p361_p0 = scmp.ne.s32.totalorder %s29_s16, %s360_s17  ;;  %p366_p2 = scmp.lt.s32.totalorder %s360_s17, %s360_s17 }
   0x8   :  { %p367_p3 = por %p366_p2, %p365_p1 }
   0xa   :  { %p368_p4 = pnand %p367_p3, %p361_p0 }
   0xc   :  { %371 = shalt.err (!%p368_p4)
}
   0xd   :  { %s461_s18 = smov 64   ;;  %s462_s19 = smov 4  }
   0xe   :  { %34 = dma.hbm_to_vmem [thread:$0]  %s516_s1, 128, %s29_s16, [#allocation6], %s461_s18, %s461_s18, %s462_s19  }
   0xf   :  { %s463_s22 = smov [#allocation2]   ;;  %s464_s24 = smov [#allocation7]  }
  0x10   :  { %s19_s23 = sshll.u32 %s463_s22, 4  ;;  %s41_s25 = sshll.u32 %s464_s24, 4  ;;  %s20_s23 = int_to_ptr.vmem [resolvable:$true] %s19_s23  ;;  %s42_s25 = int_to_ptr.vmem [resolvable:$true] %s41_s25 }
  0x11   :  { %s380_s26 = scalar_lea.vmem %s20_s23, 128  ;;  %p385_p6 = scmp.lt.s32.totalorder %s20_s23, %s20_s23 }
  0x12   :  { %p381_p5 = scmp.ne.s32.totalorder %s20_s23, %s380_s26  ;;  %p386_p7 = scmp.lt.s32.totalorder %s380_s26, %s380_s26 }
  0x14   :  { %p387_p8 = por %p386_p7, %p385_p6 }
  0x16   :  { %p388_p9 = pnand %p387_p8, %p381_p5 }
  0x18   :  { %391 = shalt.err (!%p388_p9)
}
  0x19   :  { %22 = dma.hbm_to_vmem [thread:$0]  %s515_s0, 128, %s20_s23, [#allocation3]  }
  0x1a   :  { %s400_s29 = scalar_lea.vmem %s42_s25, 64  ;;  %p405_p11 = scmp.lt.s32.totalorder %s42_s25, %s42_s25 }
  0x1b   :  { %p401_p10 = scmp.ne.s32.totalorder %s42_s25, %s400_s29  ;;  %p406_p12 = scmp.lt.s32.totalorder %s400_s29, %s400_s29 }
  0x1d   :  { %p407_p13 = por %p406_p12, %p405_p11 }
  0x1f   :  { %p408_p0 = pnand %p407_p13, %p401_p10 }
  0x21   :  { %411 = shalt.err (!%p408_p0)
}
  0x22   :  { %44 = dma.hbm_to_vmem [thread:$0]  %s517_s2, 64, %s42_s25, [#allocation6]  }
  0x23   :  { %s465_s5 = smov [#allocation8]  }
  0x24   :  { %s50_s6 = sshll.u32 %s465_s5, 4  ;;  %s51_s6 = int_to_ptr.vmem [resolvable:$true] %s50_s6 }
  0x25   :  { %s420_s7 = scalar_lea.vmem %s51_s6, 1024  ;;  %p425_p2 = scmp.lt.s32.totalorder %s51_s6, %s51_s6 }
  0x26   :  { %p421_p1 = scmp.ne.s32.totalorder %s51_s6, %s420_s7  ;;  %p426_p3 = scmp.lt.s32.totalorder %s420_s7, %s420_s7 }
  0x28   :  { %p427_p4 = por %p426_p3, %p425_p2 }
  0x2a   :  { %p428_p5 = pnand %p427_p4, %p421_p1 }
  0x2c   :  { %431 = shalt.err (!%p428_p5)
}
  0x2d   :  { %56 = dma.hbm_to_vmem [thread:$0]  %s518_s3, 1024, %s51_s6, [#allocation9], %s461_s18, %s461_s18, %s462_s19  }
  0x2e   :  { %452 = dma.done.wait [#allocation3], 128  }
  0x2f   :  { %453 = vsyncadd [#allocation3], 4294967168 }
  0x30   :  { %454 = dma.done.wait [#allocation6], 192  }
  0x31   :  { %455 = vsyncadd [#allocation6], 4294967104 }
  0x32   :  { %456 = dma.done.wait [#allocation9], 1024  }
  0x33   :  { %457 = vsyncadd [#allocation9], 4294966272  ;;  %v466_v0 = vmov 0.0   ;;  %vm467_vm0 = vmmov 0   ;;  %vm84_vm1 = vcmask 1044480   ;;  %v71_v2 = vld [vmem:[#allocation2] sm:$0xff]  ;;  %v147_v34 = vlaneseq }
  0x34   :  { %306 = vmatprep.subr.bf16.mxu0 %v466_v0  ;;  %308 = vmatprep.mubr.msk.bf16.mxu0 %vm467_vm0, %v466_v0  ;;  %v341_v1 = vld [vmem:[#allocation5] sm:$0x1f]   ;;  %v72_v4 = vpack.c.bf16 %v71_v2, %v71_v2  ;;  %vm80_vm2 = vcmask 80896   ;;  %v344_v7 = vld [vmem:[#allocation8 + $0x28] sm:$0xff]   ;;  %v345_v8 = vld [vmem:[#allocation8 + $0x20] sm:$0xff]   ;;  %s468_s2 = smov [#allocation10]  }
  0x35   :  { %312 = vmatprep.subr.bf16.mxu1 %v466_v0  ;;  %328 = vmatprep.mubr.msk.bf16.mxu1 %vm467_vm0, %v466_v0  ;;  %v86_v3 = vsel %vm84_vm1, %v341_v1, 0  ;;  %v342_v5 = vld [vmem:[#allocation8 + $0x38] sm:$0xff]   ;;  %v343_v6 = vld [vmem:[#allocation8 + $0x30] sm:$0xff]   ;;  %v348_v11 = vld [vmem:[#allocation8 + $0x8] sm:$0xff]   ;;  %v148_v35 = vshrl.u32 %v147_v34, 7  ;;  %s274_s3 = sshll.u32 %s468_s2, 4  ;;  %s275_s3 = int_to_ptr.vmem [resolvable:$true] %s274_s3 }
  0x36   :  { %307 = vmatpush3.bf16.msra.mxu0 %v86_v3  ;;  %313 = vmatpush3.bf16.msra.mxu1 %v342_v5  ;;  %v346_v9 = vld [vmem:[#allocation8 + $0x18] sm:$0xff]   ;;  %v347_v10 = vld [vmem:[#allocation8 + $0x10] sm:$0xff]   ;;  %v349_v12 = vld [vmem:[#allocation8] sm:$0xff]   ;;  %s432_s9 = scalar_lea.vmem %s275_s3, 128  ;;  %p437_p7 = scmp.lt.s32.totalorder %s275_s3, %s275_s3 }
  0x37   :  { %314 = vmatprep.subr.bf16.mxu1 %v466_v0  ;;  %v70_v36 = vld [vmem:[#allocation7] sm:$0x7]  ;;  %v149_v37 = vsub.s32 0, %v148_v35  ;;  %v154_v38 = vsub.s32 1, %v148_v35  ;;  %v177_v47 = vsub.s32 2, %v148_v35  ;;  %p433_p6 = scmp.ne.s32.totalorder %s275_s3, %s432_s9  ;;  %p438_p8 = scmp.lt.s32.totalorder %s432_s9, %s432_s9 }
  0x39   :  { %309 = vmatmul.mubr.msk.bf16.vlgmr.msra.gmra.mxu0 %vm80_vm2, %v72_v4  ;;  %v155_v42 = vrot.slane %v70_v36, %v154_v38  ;;  %v178_v48 = vrot.slane %v70_v36, %v177_v47  ;;  %p439_p9 = por %p438_p8, %p437_p7 }
  0x3a   :  { %315 = vmatpush3.bf16.msra.mxu1 %v343_v6 }
  0x3b   :  { %316 = vmatprep.subr.bf16.mxu1 %v466_v0  ;;  %p440_p10 = pnand %p439_p9, %p433_p6 }
  0x3e   :  { %317 = vmatpush3.bf16.msra.mxu1 %v344_v7 }
  0x3f   :  { %318 = vmatprep.subr.bf16.mxu1 %v466_v0 }
  0x42   :  { %319 = vmatpush3.bf16.msra.mxu1 %v345_v8 }
  0x43   :  { %320 = vmatprep.subr.bf16.mxu1 %v466_v0 }
  0x46   :  { %321 = vmatpush3.bf16.msra.mxu1 %v346_v9 }
  0x47   :  { %322 = vmatprep.subr.bf16.mxu1 %v466_v0 }
  0x4a   :  { %323 = vmatpush3.bf16.msra.mxu1 %v347_v10 }
  0x4b   :  { %324 = vmatprep.subr.bf16.mxu1 %v466_v0 }
  0x4e   :  { %325 = vmatpush3.bf16.msra.mxu1 %v348_v11 }
  0x4f   :  { %326 = vmatprep.subr.bf16.mxu1 %v466_v0 }
  0x52   :  { %327 = vmatpush3.bf16.msra.mxu1 %v349_v12 }
  0xf9   :  { %v122_v13 = vpop.f32.mrf.mxu0 }
  0xfa   :  { %v128_v14 = vrot.slane %v122_v13, 4 }
  0xfb   :  { %v310_v15 = vpop.f32.mrf.mxu0 }
  0xfc   :  { %v129_v16 = vadd.f32 %v128_v14, %v122_v13 }
  0xfd   :  { %v125_v17 = vpop.f32.mrf.mxu0 }
  0xfe   :  { %v130_v18 = vrot.slane %v129_v16, 2 }
  0xff   :  { %v311_v19 = vpop.f32.mrf.mxu0 }
 0x100   :  { %v131_v20 = vadd.f32 %v130_v18, %v129_v16 }
 0x102   :  { %v132_v21 = vrot.slane %v131_v20, 1 }
 0x104   :  { %v133_v22 = vadd.f32 %v132_v21, %v131_v20 }
 0x106   :  { %v134_v23 = vmul.f32 0.125, %v133_v22 }
 0x108   :  { %v135_v24 = vsub.f32 %v122_v13, %v134_v23 }
 0x10a   :  { %v136_v25 = vmul.f32 %v135_v24, %v135_v24 }
 0x10c   :  { %v137_v26 = vrot.slane %v136_v25, 4 }
 0x10e   :  { %v138_v27 = vadd.f32 %v137_v26, %v136_v25 }
 0x110   :  { %v139_v28 = vrot.slane %v138_v27, 2 }
 0x112   :  { %v140_v29 = vadd.f32 %v139_v28, %v138_v27 }
 0x114   :  { %v141_v30 = vrot.slane %v140_v29, 1 }
 0x116   :  { %v142_v31 = vadd.f32 %v141_v30, %v140_v29 }
 0x118   :  { %v143_v32 = vmul.f32 0.125, %v142_v31 }
 0x11a   :  { %v144_v33 = vadd.f32 1e-05, %v143_v32 }
 0x11c   :  { %350 = vrsqrt.f32 %v144_v33 }
 0x129   :  { %v351_v39 = vpop.eup %350 }
 0x12a   :  { %v146_v40 = vmul.f32 %v351_v39, %v70_v36 }
 0x12c   :  { %v150_v41 = vrot.slane %v146_v40, %v149_v37 }
 0x12e   :  { %v151_v43 = vmul.f32 %v150_v41, %v135_v24 }
 0x130   :  { %v156_v44 = vadd.f32 %v155_v42, %v151_v43 }
 0x132   :  { %v157_v45 = vmax.f32 %v156_v44, 0.0 }
 0x134   :  { %v158_v46 = vpack.c.bf16 %v157_v45, %v157_v45 }
 0x136   :  { %329 = vmatmul.mubr.bf16.vlgmr.msra.gmra.mxu1 %v158_v46 }
 0x1f6   :  { %v261_v49 = vpop.f32.mrf.mxu1 }
 0x1f7   :  { %v262_v50 = vadd.f32 %v261_v49, %v178_v48 }
 0x1f8   :  { %v330_v51 = vpop.f32.mrf.mxu1 }
 0x1f9   :  { %267 = vst [vmem:[#allocation10] sm:$0xff] %v262_v50 }
 0x1fa   :  { %v264_v52 = vpop.f32.mrf.mxu1 }
 0x1fb   :  { %443 = shalt.err (!%p440_p10)
}
 0x1fc   :  { %277 = dma.vmem_to_hbm [thread:$0]  %s275_s3, 128, %s519_s4, [#allocation4]   ;;  %v331_v53 = vpop.f32.mrf.mxu1 }
 0x1fd   :  { %458 = dma.done.wait [#allocation4], 128  }
 0x1fe   :  { %459 = vsyncadd [#allocation4], 4294967168 }
 0x1ff   :  { %281 = vsyncpa [#allocation3], 1 }
 0x200   :  { %282 = vsyncpa [#allocation6], 1 }
 0x201   :  { %283 = vsyncpa [#allocation9], 1 }
 0x202   :  { %284 = vsyncpa [#allocation4], 1 }

</bundles_post_ra>
